<compile_context>
chip_gen: v5e
topology: v5e:2x2
jax: 0.10.0
libtpu: 0.0.40
codegen_flags: <defaults>
</compile_context>

<pallas_src>
import functools

import jax
import jax.numpy as jnp
from jax.experimental import pallas as pl
from jax.experimental.pallas import tpu as pltpu

_LANE = 128          # TPU lane width
_MAX_CHUNKS = 64     # cap on unrolled 128-lane adds per grid step (tt <= 8192)


def _cdiv(a, b):
    return -(-a // b)


def _vmem_params():
    """(per-input-buffer byte budget, vmem_limit_bytes), generation-aware."""
    cap = None
    try:
        info = pltpu.get_tpu_info()
        cap = getattr(info, "vmem_capacity_bytes", None)
    except Exception:
        cap = None
    if not cap or cap <= 0:
        cap = 64 * 1024 * 1024                  # conservative: assume v7x-sized VMEM
    if cap >= 96 * 1024 * 1024:                 # v5e / v6e: 128 MiB physical VMEM
        return 24 * 1024 * 1024, 64 * 1024 * 1024
    return 12 * 1024 * 1024, 32 * 1024 * 1024   # v7x: 64 MiB physical VMEM


def _pick_time_block(T, B, C, itemsize, budget_bytes):
    """Largest multiple-of-128 time tile fitting the per-buffer budget.

    Independent of T's divisibility (the kernel masks the tail tile).  Capped so
    (a) the unrolled per-step chunk loop stays small and (b) at least two tiles
    exist whenever T > 128, so the 2-way core split always has work.
    """
    if T <= _LANE:
        return T                                         # single full-dim block
    chunk_bytes = B * C * _LANE * itemsize
    chunks = max(1, budget_bytes // chunk_bytes)
    chunks = min(chunks, _MAX_CHUNKS)
    chunks = max(1, min(chunks, _cdiv(_cdiv(T, 2), _LANE)))
    return int(chunks) * _LANE


def _time_sum_kernel(x_ref, part_ref, acc_ref, *, tt, lane, chunks, n_split,
                     T, mask_tail):
    """grid = (n_split 'parallel', time tiles 'arbitrary').

    x_ref    : (B, C, tt)   native-dtype tile (time tiles interleaved across splits)
    part_ref : (1, B, C)    f32 per-split partial time-sum (written on last step)
    acc_ref  : (B, C, lane) f32 VMEM accumulator (lane reduce deferred to epilogue)
    """
    s = pl.program_id(0)
    t = pl.program_id(1)
    last_t = pl.num_programs(1) - 1

    @pl.when(t == 0)
    def _init():
        acc_ref[...] = jnp.zeros_like(acc_ref)

    def _accum(xv):
        # Pure element-wise adds over aligned 128-lane chunks (VALU only);
        # the single cross-lane reduce happens in the epilogue below.
        partial = acc_ref[...]
        for j in range(chunks):
            partial = partial + xv[:, :, j * lane:(j + 1) * lane]
        acc_ref[...] = partial

    @pl.when(t != last_t)
    def _steady():                       # full tiles: no masking in steady state
        _accum(x_ref[...].astype(jnp.float32))

    @pl.when(t == last_t)
    def _last():
        xv = x_ref[...].astype(jnp.float32)
        if mask_tail:
            # Interleaved global tile index: tiles reaching past T (partial tail
            # tile, or a clamped duplicate tile) contribute zero.
            g = t * n_split + s
            valid = T - g * tt           # may exceed tt (full) or be <= 0 (dup)
            pos = jax.lax.broadcasted_iota(jnp.int32, xv.shape, 2)
            xv = jnp.where(pos < valid, xv, 0.0)
        _accum(xv)
        part_ref[...] = jnp.sum(acc_ref[...], axis=-1)[None]


def _mlp_kernel(part_ref, w1b1_ref, w2b2_ref, o_ref, *, inv_t):
    """Combine per-split partial sums, then Linear->Tanh->ReLU->Linear->batch-mean."""
    m = jnp.sum(part_ref[...], axis=0) * inv_t           # (B, C) time-mean, f32
    w1b1 = w1b1_ref[...]                                  # (C+1, 4)
    w2b2 = w2b2_ref[...]                                  # (5, C)
    w1, b1 = w1b1[:-1, :], w1b1[-1:, :]                   # (C,4), (1,4)
    w2, b2 = w2b2[:-1, :], w2b2[-1:, :]                   # (4,C), (1,C)
    h = jnp.dot(m, w1, preferred_element_type=jnp.float32) + b1
    h = jnp.maximum(jnp.tanh(h), 0.0)                     # Tanh then ReLU (as in torch)
    y = jnp.dot(h, w2, preferred_element_type=jnp.float32) + b2
    o_ref[...] = jnp.mean(y, axis=0, keepdims=True)       # batch-mean -> (1, C)


def my_channel_attention(x, w1, b1, w2, b2, *, time_block=None):
    """x: (B, C, T) float; w1: (C, 4); b1: (4,); w2: (4, C); b2: (C,) -> (C,) f32."""
    B, C, T = x.shape
    itemsize = jnp.dtype(x.dtype).itemsize
    budget, vmem_limit = _vmem_params()

    tt = time_block if time_block is not None else _pick_time_block(
        T, B, C, itemsize, budget)
    assert tt == T or tt % _LANE == 0, "time_block must be the full T or a multiple of 128"
    lane = _LANE if tt % _LANE == 0 else tt
    chunks = tt // lane

    steps_total = _cdiv(T, tt)
    n_split = 2 if steps_total >= 2 else 1      # 2-way core split when there is work
    sps = _cdiv(steps_total, n_split)           # time steps per split
    mask_tail = (T % tt != 0) or (n_split * sps != steps_total)

    # Defensive bump for pathological B*C where one chunk already exceeds budget.
    tile_bytes = B * C * tt * itemsize
    acc_bytes = B * C * lane * 4
    vmem_limit = max(vmem_limit, 2 * tile_bytes + acc_bytes + (2 << 20))

    def x_index_map(s, t):
        # Interleaved tile assignment; clamp so a duplicated tail tile never DMAs
        # out of bounds (its contribution is masked to zero inside the kernel).
        return (0, 0, jnp.minimum(t * n_split + s, steps_total - 1))

    kernel_a = functools.partial(
        _time_sum_kernel, tt=tt, lane=lane, chunks=chunks, n_split=n_split,
        T=T, mask_tail=mask_tail)

    partial_sums = pl.pallas_call(
        kernel_a,
        out_shape=jax.ShapeDtypeStruct((n_split, B, C), jnp.float32),
        grid_spec=pltpu.PrefetchScalarGridSpec(
            num_scalar_prefetch=0,
            grid=(n_split, sps),
            in_specs=[pl.BlockSpec((B, C, tt), x_index_map)],
            out_specs=pl.BlockSpec((1, B, C), lambda s, t: (s, 0, 0)),
            scratch_shapes=[pltpu.VMEM((B, C, lane), jnp.float32)],
        ),
        compiler_params=pltpu.CompilerParams(
            dimension_semantics=("parallel", "arbitrary"),
            vmem_limit_bytes=vmem_limit,
        ),
    )(x)

    # Fold biases into the weight arrays so the tiny MLP kernel carries 3 operands.
    w1b1 = jnp.concatenate(
        [w1.astype(jnp.float32), b1.reshape(1, -1).astype(jnp.float32)], axis=0)
    w2b2 = jnp.concatenate(
        [w2.astype(jnp.float32), b2.reshape(1, -1).astype(jnp.float32)], axis=0)

    out = pl.pallas_call(
        functools.partial(_mlp_kernel, inv_t=1.0 / float(T)),
        out_shape=jax.ShapeDtypeStruct((1, C), jnp.float32),
    )(partial_sums, w1b1, w2b2)
    return out[0]


def _reference(x, w1, b1, w2, b2):
    m = jnp.mean(x.astype(jnp.float32), axis=-1)
    h = jnp.maximum(jnp.tanh(m @ w1 + b1), 0.0)
    y = h @ w2 + b2
    return jnp.mean(y, axis=0)


if __name__ == "__main__":
    key = jax.random.PRNGKey(0)
    B, C = 2, 64  # module default cha=64

    k_x1, k_x2, k_x3, k_w1, k_b1, k_w2, k_b2 = jax.random.split(key, 7)

    # nn.Linear-style uniform init.
    lim1 = 1.0 / jnp.sqrt(jnp.float32(C))
    w1 = jax.random.uniform(k_w1, (C, 4), minval=-lim1, maxval=lim1, dtype=jnp.float32)
    b1 = jax.random.uniform(k_b1, (4,), minval=-lim1, maxval=lim1, dtype=jnp.float32)
    lim2 = 1.0 / jnp.sqrt(jnp.float32(4))
    w2 = jax.random.uniform(k_w2, (4, C), minval=-lim2, maxval=lim2, dtype=jnp.float32)
    b2 = jax.random.uniform(k_b2, (C,), minval=-lim2, maxval=lim2, dtype=jnp.float32)

    # 1) f32, tiny T (single full-dim tile, no split, no masking).
    x1 = jax.random.normal(k_x1, (B, C, 16), dtype=jnp.float32)
    out1 = jax.block_until_ready(my_channel_attention(x1, w1, b1, w2, b2))
    ref1 = _reference(x1, w1, b1, w2, b2)
    assert out1.shape == (C,)
    assert jnp.allclose(out1, ref1, atol=1e-5, rtol=1e-5), "test 1 (f32, T=16) mismatch"

    # 2) f32, T=1536 via the default tile selector: 768-wide tiles, 2-way split,
    #    no tail masking.
    x2 = jax.random.normal(k_x2, (B, C, 1536), dtype=jnp.float32)
    out2 = jax.block_until_ready(my_channel_attention(x2, w1, b1, w2, b2))
    ref2 = _reference(x2, w1, b1, w2, b2)
    assert jnp.allclose(out2, ref2, atol=1e-5, rtol=1e-5), "test 2 (f32, T=1536) mismatch"

    # 3) bf16, T=600 with a forced 128-wide tile: 5 tiles (odd), exercising the
    #    interleaved 2-way split, the partial tail tile and the zeroed duplicate.
    x3 = jax.random.normal(k_x3, (B, C, 600), dtype=jnp.float32).astype(jnp.bfloat16)
    out3 = jax.block_until_ready(
        my_channel_attention(x3, w1, b1, w2, b2, time_block=128))
    ref3 = _reference(x3, w1, b1, w2, b2)
    assert jnp.allclose(out3, ref3, atol=5e-4, rtol=5e-4), "test 3 (bf16, T=600) mismatch"

    print("KERNEL_OK")
</pallas_src>

<mosaic_0001>
module attributes {stable_mosaic.version = 11 : i64} {
  func.func @_time_sum_kernel(%arg0: i32, %arg1: i32, %arg2: memref<2x64x16xf32, #tpu.memory_space<vmem>>, %arg3: memref<1x2x64xf32, #tpu.memory_space<vmem>>, %arg4: memref<2x64x16xf32, #tpu.memory_space<vmem>>) attributes {dimension_semantics = [#tpu.dimension_semantics<parallel>, #tpu.dimension_semantics<arbitrary>], iteration_bounds = array<i64: 1, 1>, scalar_prefetch = 0 : i64, scratch_operands = 1 : i64, tpu.core_type = #tpu.core_type<tc>, window_params = [{transform_indices = @transform_0, window_bounds = array<i64: 2, 64, 16>}, {transform_indices = @transform_1, window_bounds = array<i64: 1, 2, 64>}]} {
    %c0_i32 = arith.constant 0 : i32
    %0 = arith.cmpi eq, %arg1, %c0_i32 : i32
    %1 = arith.extui %0 : i1 to i32
    %c0_i32_0 = arith.constant 0 : i32
    %2 = arith.cmpi ne, %1, %c0_i32_0 : i32
    scf.if %2 {
      %cst = arith.constant 0.000000e+00 : f32
      %9 = vector.broadcast %cst : f32 to vector<2x64x16xf32>
      %c0 = arith.constant 0 : index
      %c0_5 = arith.constant 0 : index
      %c0_6 = arith.constant 0 : index
      %10 = vector.load %arg4[%c0, %c0_5, %c0_6] : memref<2x64x16xf32, #tpu.memory_space<vmem>>, vector<2x64x16xf32>
      tpu.vector_store %arg4[%c0, %c0_5, %c0_6], %9 {strides = array<i32>} : memref<2x64x16xf32, #tpu.memory_space<vmem>>, vector<2x64x16xf32>,
    } else {
    }
    %c0_i32_1 = arith.constant 0 : i32
    %3 = arith.cmpi ne, %arg1, %c0_i32_1 : i32
    %4 = arith.extui %3 : i1 to i32
    %c0_i32_2 = arith.constant 0 : i32
    %5 = arith.cmpi ne, %4, %c0_i32_2 : i32
    scf.if %5 {
      %c0 = arith.constant 0 : index
      %c0_5 = arith.constant 0 : index
      %c0_6 = arith.constant 0 : index
      %9 = vector.load %arg2[%c0, %c0_5, %c0_6] : memref<2x64x16xf32, #tpu.memory_space<vmem>>, vector<2x64x16xf32>
      %c0_7 = arith.constant 0 : index
      %c0_8 = arith.constant 0 : index
      %c0_9 = arith.constant 0 : index
      %10 = vector.load %arg4[%c0_7, %c0_8, %c0_9] : memref<2x64x16xf32, #tpu.memory_space<vmem>>, vector<2x64x16xf32>
      %11 = arith.addf %10, %9 : vector<2x64x16xf32>
      %c0_10 = arith.constant 0 : index
      %c0_11 = arith.constant 0 : index
      %c0_12 = arith.constant 0 : index
      %12 = vector.load %arg4[%c0_10, %c0_11, %c0_12] : memref<2x64x16xf32, #tpu.memory_space<vmem>>, vector<2x64x16xf32>
      tpu.vector_store %arg4[%c0_10, %c0_11, %c0_12], %11 {strides = array<i32>} : memref<2x64x16xf32, #tpu.memory_space<vmem>>, vector<2x64x16xf32>,
    } else {
    }
    %c0_i32_3 = arith.constant 0 : i32
    %6 = arith.cmpi eq, %arg1, %c0_i32_3 : i32
    %7 = arith.extui %6 : i1 to i32
    %c0_i32_4 = arith.constant 0 : i32
    %8 = arith.cmpi ne, %7, %c0_i32_4 : i32
    scf.if %8 {
      %c0 = arith.constant 0 : index
      %c0_5 = arith.constant 0 : index
      %c0_6 = arith.constant 0 : index
      %9 = vector.load %arg2[%c0, %c0_5, %c0_6] : memref<2x64x16xf32, #tpu.memory_space<vmem>>, vector<2x64x16xf32>
      %c0_7 = arith.constant 0 : index
      %c0_8 = arith.constant 0 : index
      %c0_9 = arith.constant 0 : index
      %10 = vector.load %arg4[%c0_7, %c0_8, %c0_9] : memref<2x64x16xf32, #tpu.memory_space<vmem>>, vector<2x64x16xf32>
      %11 = arith.addf %10, %9 : vector<2x64x16xf32>
      %c0_10 = arith.constant 0 : index
      %c0_11 = arith.constant 0 : index
      %c0_12 = arith.constant 0 : index
      %12 = vector.load %arg4[%c0_10, %c0_11, %c0_12] : memref<2x64x16xf32, #tpu.memory_space<vmem>>, vector<2x64x16xf32>
      tpu.vector_store %arg4[%c0_10, %c0_11, %c0_12], %11 {strides = array<i32>} : memref<2x64x16xf32, #tpu.memory_space<vmem>>, vector<2x64x16xf32>,
      %c0_13 = arith.constant 0 : index
      %c0_14 = arith.constant 0 : index
      %c0_15 = arith.constant 0 : index
      %13 = vector.load %arg4[%c0_13, %c0_14, %c0_15] : memref<2x64x16xf32, #tpu.memory_space<vmem>>, vector<2x64x16xf32>
      %cst = arith.constant dense<0.000000e+00> : vector<2x64xf32>
      %14 = vector.multi_reduction <add>, %13, %cst [2] : vector<2x64x16xf32> to vector<2x64xf32>
      %15 = vector.shape_cast %14 : vector<2x64xf32> to vector<1x2x64xf32>
      %c0_16 = arith.constant 0 : index
      %c0_17 = arith.constant 0 : index
      %c0_18 = arith.constant 0 : index
      %16 = vector.load %arg3[%c0_16, %c0_17, %c0_18] : memref<1x2x64xf32, #tpu.memory_space<vmem>>, vector<1x2x64xf32>
      tpu.vector_store %arg3[%c0_16, %c0_17, %c0_18], %15 {strides = array<i32>} : memref<1x2x64xf32, #tpu.memory_space<vmem>>, vector<1x2x64xf32>,
    } else {
    }
    return
  }
  func.func @transform_0(%arg0: i32, %arg1: i32) -> (i32, i32, i32) {
    %c1_i32 = arith.constant 1 : i32
    %0 = arith.muli %arg1, %c1_i32 : i32
    %1 = arith.addi %0, %arg0 : i32
    %c0_i32 = arith.constant 0 : i32
    %2 = arith.minsi %1, %c0_i32 : i32
    %c0_i32_0 = arith.constant 0 : i32
    %c0_i32_1 = arith.constant 0 : i32
    %c0_i32_2 = arith.constant 0 : i32
    return %c0_i32_0, %c0_i32_1, %2 : i32, i32, i32
  }
  func.func @transform_1(%arg0: i32, %arg1: i32) -> (i32, i32, i32) {
    %c0_i32 = arith.constant 0 : i32
    %c0_i32_0 = arith.constant 0 : i32
    %c0_i32_1 = arith.constant 0 : i32
    return %arg0, %c0_i32, %c0_i32_0 : i32, i32, i32
  }
}

</mosaic_0001>

<bundles_post_ra>
// kernel: tpu_custom_call.1
= control target key start
LH: loop header
LB: loop body
LE: loop exit
PB: predicated region body
PF: predicated region fallthrough
CT: control target
= control target key end

     0   :  { %vm40_vm0 = vcmask 130048   ;;  %v375_v0 = vmov 0.0   ;;  %s492_s0 = inlined_call_operand.vmem [shape: f32[2,64,16], index: 0, kind: input, shape index: {}]   ;;  %s493_s1 = inlined_call_operand.hbm [shape: f32[1,2,64], index: 1, kind: output, shape index: {}]  }
   0x1   :  { %49 = vst.msk [vmem:[#allocation2 + $0x40] sm:$0xff] %vm40_vm0, %v375_v0 }
   0x2   :  { %41 = vst.msk [vmem:[#allocation2] sm:$0xff] %vm40_vm0, %v375_v0 }
   0x3   :  { %42 = vst.msk [vmem:[#allocation2 + $0x8] sm:$0xff] %vm40_vm0, %v375_v0 }
   0x4   :  { %6 = vsyncpa [#allocation4], 0  ;;  %43 = vst.msk [vmem:[#allocation2 + $0x10] sm:$0xff] %vm40_vm0, %v375_v0  ;;  %v137_v1 = vld [vmem:[%s492_s0 + $0x40] sm:$0xff]  ;;  %v131_v6 = vld [vmem:[%s492_s0 + $0x10] sm:$0xff]  ;;  %vm279_vm1 = vcmask 130112  }
   0x5   :  { %44 = vst.msk [vmem:[#allocation2 + $0x18] sm:$0xff] %vm40_vm0, %v375_v0  ;;  %v129_v4 = vld [vmem:[%s492_s0] sm:$0xff]  ;;  %v130_v9 = vld [vmem:[%s492_s0 + $0x8] sm:$0xff]  ;;  %v139_v13 = vld [vmem:[%s492_s0 + $0x50] sm:$0xff]  ;;  %vm283_vm2 = vcmask 195712   ;;  %vm287_vm3 = vcmask 261312  }
   0x6   :  { %45 = vst.msk [vmem:[#allocation2 + $0x20] sm:$0xff] %vm40_vm0, %v375_v0  ;;  %v138_v12 = vld [vmem:[%s492_s0 + $0x48] sm:$0xff]  ;;  %v140_v14 = vld [vmem:[%s492_s0 + $0x58] sm:$0xff]  ;;  %v133_v21 = vld [vmem:[%s492_s0 + $0x20] sm:$0xff]  ;;  %vm291_vm4 = vcmask 326912   ;;  %vm295_vm5 = vcmask 392512  }
   0x7   :  { %46 = vst.msk [vmem:[#allocation2 + $0x28] sm:$0xff] %vm40_vm0, %v375_v0  ;;  %v132_v17 = vld [vmem:[%s492_s0 + $0x18] sm:$0xff]  ;;  %v134_v25 = vld [vmem:[%s492_s0 + $0x28] sm:$0xff]  ;;  %v141_v30 = vld [vmem:[%s492_s0 + $0x60] sm:$0xff]  ;;  %vm299_vm6 = vcmask 458112   ;;  %vm303_vm7 = vcmask 523712  }
   0x8   :  { %v153_v2 = vld [vmem:[#allocation2 + $0x40] sm:$0xff]  ;;  %47 = vst.msk [vmem:[#allocation2 + $0x30] sm:$0xff] %vm40_vm0, %v375_v0  ;;  %v142_v34 = vld [vmem:[%s492_s0 + $0x68] sm:$0xff]  ;;  %v143_v37 = vld [vmem:[%s492_s0 + $0x70] sm:$0xff]  ;;  %s332_s12 = sshll.u32 %s493_s1, 4  ;;  %vm320_vm8 = vcmask 1041409   ;;  %s333_s12 = int_to_ptr.hbm [resolvable:$true] %s332_s12 }
   0x9   :  { %v169_v3 = vadd.f32 %v153_v2, %v137_v1  ;;  %48 = vst.msk [vmem:[#allocation2 + $0x38] sm:$0xff] %vm40_vm0, %v375_v0  ;;  %v145_v5 = vld [vmem:[#allocation2] sm:$0xff]  ;;  %v135_v40 = vld [vmem:[%s492_s0 + $0x30] sm:$0xff]  ;;  %v136_v43 = vld [vmem:[%s492_s0 + $0x38] sm:$0xff]  ;;  %vm323_vm9 = vcmask 517120  }
   0xa   :  { %50 = vst.msk [vmem:[#allocation2 + $0x48] sm:$0xff] %vm40_vm0, %v375_v0  ;;  %v161_v8 = vadd.f32 %v145_v5, %v129_v4  ;;  %v146_v10 = vld [vmem:[#allocation2 + $0x8] sm:$0xff]  ;;  %v144_v47 = vld [vmem:[%s492_s0 + $0x78] sm:$0xff]  ;;  %s376_s0 = smov [#allocation3]  }
   0xb   :  { %186 = vst.msk [vmem:[#allocation2 + $0x40] sm:$0xff] %vm40_vm0, %v169_v3  ;;  %v147_v7 = vld [vmem:[#allocation2 + $0x10] sm:$0xff]  ;;  %v162_v16 = vadd.f32 %v146_v10, %v130_v9  ;;  %s330_s9 = sshll.u32 %s376_s0, 4  ;;  %s331_s9 = int_to_ptr.vmem [resolvable:$true] %s330_s9 }
   0xc   :  { %51 = vst.msk [vmem:[#allocation2 + $0x50] sm:$0xff] %vm40_vm0, %v375_v0  ;;  %v163_v11 = vadd.f32 %v147_v7, %v131_v6  ;;  %v148_v18 = vld [vmem:[#allocation2 + $0x18] sm:$0xff] }
   0xd   :  { %52 = vst.msk [vmem:[#allocation2 + $0x58] sm:$0xff] %vm40_vm0, %v375_v0  ;;  %v149_v22 = vld [vmem:[#allocation2 + $0x20] sm:$0xff]  ;;  %v164_v29 = vadd.f32 %v148_v18, %v132_v17 }
   0xe   :  { %53 = vst.msk [vmem:[#allocation2 + $0x60] sm:$0xff] %vm40_vm0, %v375_v0  ;;  %v150_v26 = vld [vmem:[#allocation2 + $0x28] sm:$0xff]  ;;  %v165_v32 = vadd.f32 %v149_v22, %v133_v21 }
   0xf   :  { %54 = vst.msk [vmem:[#allocation2 + $0x68] sm:$0xff] %vm40_vm0, %v375_v0  ;;  %v166_v35 = vadd.f32 %v150_v26, %v134_v25  ;;  %v151_v41 = vld [vmem:[#allocation2 + $0x30] sm:$0xff]  ;;  %v274_v25 = vlaneseq }
  0x10   :  { %55 = vst.msk [vmem:[#allocation2 + $0x70] sm:$0xff] %vm40_vm0, %v375_v0  ;;  %v152_v44 = vld [vmem:[#allocation2 + $0x38] sm:$0xff]  ;;  %v167_v51 = vadd.f32 %v151_v41, %v135_v40 }
  0x11   :  { %56 = vst.msk [vmem:[#allocation2 + $0x78] sm:$0xff] %vm40_vm0, %v375_v0  ;;  %v154_v15 = vld [vmem:[#allocation2 + $0x48] sm:$0xff]  ;;  %v168_v54 = vadd.f32 %v152_v44, %v136_v43 }
  0x12   :  { %v202_v19 = vld [vmem:[#allocation2 + $0x40] sm:$0xff]  ;;  %178 = vst.msk [vmem:[#allocation2] sm:$0xff] %vm40_vm0, %v161_v8  ;;  %v170_v20 = vadd.f32 %v154_v15, %v138_v12 }
  0x13   :  { %v234_v23 = vsel %vm40_vm0, %v202_v19, 0.0  ;;  %180 = vst.msk [vmem:[#allocation2 + $0x10] sm:$0xff] %vm40_vm0, %v163_v11  ;;  %v155_v24 = vld [vmem:[#allocation2 + $0x50] sm:$0xff] }
  0x14   :  { %235 = vadd.xlane.f32.xlu1 %v234_v23  ;;  %187 = vst.msk [vmem:[#allocation2 + $0x48] sm:$0xff] %vm40_vm0, %v170_v20  ;;  %v171_v27 = vadd.f32 %v155_v24, %v139_v13  ;;  %v156_v28 = vld [vmem:[#allocation2 + $0x58] sm:$0xff] }
  0x15   :  { %179 = vst.msk [vmem:[#allocation2 + $0x8] sm:$0xff] %vm40_vm0, %v162_v16  ;;  %v172_v31 = vadd.f32 %v156_v28, %v140_v14  ;;  %v157_v33 = vld [vmem:[#allocation2 + $0x60] sm:$0xff] }
  0x16   :  { %188 = vst.msk [vmem:[#allocation2 + $0x50] sm:$0xff] %vm40_vm0, %v171_v27  ;;  %v158_v36 = vld [vmem:[#allocation2 + $0x68] sm:$0xff]  ;;  %v173_v38 = vadd.f32 %v157_v33, %v141_v30  ;;  %v275_v27 = vand.u32 127, %v274_v25 }
  0x17   :  { %189 = vst.msk [vmem:[#allocation2 + $0x58] sm:$0xff] %vm40_vm0, %v172_v31  ;;  %v159_v39 = vld [vmem:[#allocation2 + $0x70] sm:$0xff]  ;;  %v174_v42 = vadd.f32 %v158_v36, %v142_v34 }
  0x18   :  { %181 = vst.msk [vmem:[#allocation2 + $0x18] sm:$0xff] %vm40_vm0, %v164_v29  ;;  %v175_v46 = vadd.f32 %v159_v39, %v143_v37  ;;  %v160_v48 = vld [vmem:[#allocation2 + $0x78] sm:$0xff]  ;;  %v277_v28 = vadd.s32 4294967288, %v275_v27  ;;  %v281_v31 = vadd.s32 4294967280, %v275_v27  ;;  %v285_v34 = vadd.s32 4294967272, %v275_v27 }
  0x19   :  { %v194_v45 = vld [vmem:[#allocation2] sm:$0xff]  ;;  %182 = vst.msk [vmem:[#allocation2 + $0x20] sm:$0xff] %vm40_vm0, %v165_v32  ;;  %v176_v56 = vadd.f32 %v160_v48, %v144_v47  ;;  %v289_v39 = vadd.s32 4294967264, %v275_v27  ;;  %v297_v44 = vadd.s32 4294967248, %v275_v27 }
  0x1a   :  { %v210_v49 = vsel %vm40_vm0, %v194_v45, 0.0  ;;  %v196_v50 = vld [vmem:[#allocation2 + $0x10] sm:$0xff]  ;;  %183 = vst.msk [vmem:[#allocation2 + $0x28] sm:$0xff] %vm40_vm0, %v166_v35 }
  0x1b   :  { %211 = vadd.xlane.f32.xlu0 %v210_v49  ;;  %v216_v52 = vsel %vm40_vm0, %v196_v50, 0.0  ;;  %v203_v53 = vld [vmem:[#allocation2 + $0x48] sm:$0xff]  ;;  %190 = vst.msk [vmem:[#allocation2 + $0x60] sm:$0xff] %vm40_vm0, %v173_v38 }
  0x1c   :  { %217 = vadd.xlane.f32.xlu2 %v216_v52  ;;  %v237_v55 = vsel %vm40_vm0, %v203_v53, 0.0  ;;  %191 = vst.msk [vmem:[#allocation2 + $0x68] sm:$0xff] %vm40_vm0, %v174_v42  ;;  %v195_v57 = vld [vmem:[#allocation2 + $0x8] sm:$0xff]  ;;  %v293_v42 = vadd.s32 4294967256, %v275_v27 }
  0x1d   :  { %238 = vadd.xlane.f32.xlu1 %v237_v55  ;;  %192 = vst.msk [vmem:[#allocation2 + $0x70] sm:$0xff] %vm40_vm0, %v175_v46  ;;  %v204_v58 = vld [vmem:[#allocation2 + $0x50] sm:$0xff]  ;;  %v213_v60 = vsel %vm40_vm0, %v195_v57, 0.0 }
  0x1e   :  { %184 = vst.msk [vmem:[#allocation2 + $0x30] sm:$0xff] %vm40_vm0, %v167_v51  ;;  %v205_v59 = vld [vmem:[#allocation2 + $0x58] sm:$0xff]  ;;  %v240_v61 = vsel %vm40_vm0, %v204_v58, 0.0 }
  0x1f   :  { %185 = vst.msk [vmem:[#allocation2 + $0x38] sm:$0xff] %vm40_vm0, %v168_v54  ;;  %v243_v62 = vsel %vm40_vm0, %v205_v59, 0.0  ;;  %v197_v63 = vld [vmem:[#allocation2 + $0x18] sm:$0xff]  ;;  %v301_v54 = vadd.s32 4294967240, %v275_v27 }
  0x20   :  { %193 = vst.msk [vmem:[#allocation2 + $0x78] sm:$0xff] %vm40_vm0, %v176_v56  ;;  %v198_v0 = vld [vmem:[#allocation2 + $0x20] sm:$0xff]  ;;  %v219_v2 = vsel %vm40_vm0, %v197_v63, 0.0 }
  0x21   :  { %v199_v1 = vld [vmem:[#allocation2 + $0x28] sm:$0xff]  ;;  %v222_v3 = vsel %vm40_vm0, %v198_v0, 0.0 }
  0x22   :  { %v225_v4 = vsel %vm40_vm0, %v199_v1, 0.0  ;;  %v206_v5 = vld [vmem:[#allocation2 + $0x60] sm:$0xff] }
  0x23   :  { %214 = vadd.xlane.f32.xlu0 %v213_v60  ;;  %v207_v6 = vld [vmem:[#allocation2 + $0x68] sm:$0xff]  ;;  %v246_v8 = vsel %vm40_vm0, %v206_v5, 0.0 }
  0x24   :  { %241 = vadd.xlane.f32.xlu2 %v240_v61  ;;  %v208_v7 = vld [vmem:[#allocation2 + $0x70] sm:$0xff]  ;;  %v249_v9 = vsel %vm40_vm0, %v207_v6, 0.0 }
  0x25   :  { %244 = vadd.xlane.f32.xlu1 %v243_v62  ;;  %v252_v10 = vsel %vm40_vm0, %v208_v7, 0.0  ;;  %v200_v11 = vld [vmem:[#allocation2 + $0x30] sm:$0xff] }
  0x26   :  { %v201_v12 = vld [vmem:[#allocation2 + $0x38] sm:$0xff]  ;;  %v228_v13 = vsel %vm40_vm0, %v200_v11, 0.0 }
  0x27   :  { %v231_v14 = vsel %vm40_vm0, %v201_v12, 0.0  ;;  %v209_v15 = vld [vmem:[#allocation2 + $0x78] sm:$0xff] }
  0x28   :  { %v255_v16 = vsel %vm40_vm0, %v209_v15, 0.0 }
  0x2b   :  { %220 = vadd.xlane.f32.xlu0 %v219_v2 }
  0x2c   :  { %223 = vadd.xlane.f32.xlu2 %v222_v3 }
  0x2d   :  { %226 = vadd.xlane.f32.xlu1 %v225_v4 }
  0x33   :  { %247 = vadd.xlane.f32.xlu0 %v246_v8 }
  0x34   :  { %250 = vadd.xlane.f32.xlu2 %v249_v9 }
  0x35   :  { %253 = vadd.xlane.f32.xlu1 %v252_v10 }
  0x3b   :  { %229 = vadd.xlane.f32.xlu0 %v228_v13 }
  0x3c   :  { %232 = vadd.xlane.f32.xlu2 %v231_v14 }
  0x43   :  { %256 = vadd.xlane.f32.xlu0 %v255_v16 }
  0x87   :  { %v236_v17 = vpop.xlane.xlu1 %235 }
  0x88   :  { %v305_v35 = vperm.slane %v236_v17, %v275_v27 }
  0x8e   :  { %v212_v18 = vpop.xlane.xlu0 %211 }
  0x8f   :  { %v218_v19 = vpop.xlane.xlu2 %217  ;;  %v276_v36 = vperm.slane %v212_v18, %v275_v27 }
  0x90   :  { %v239_v20 = vpop.xlane.xlu1 %238  ;;  %v282_v38 = vperm.slane %v218_v19, %v281_v31 }
  0x91   :  { %v306_v37 = vperm.slane %v239_v20, %v277_v28 }
  0x93   :  { %v307_v46 = vsel %vm279_vm1, %v306_v37, %v305_v35 }
  0x96   :  { %v215_v21 = vpop.xlane.xlu0 %214 }
  0x97   :  { %v242_v22 = vpop.xlane.xlu2 %241  ;;  %v278_v33 = vperm.slane %v215_v21, %v277_v28 }
  0x98   :  { %v245_v23 = vpop.xlane.xlu1 %244  ;;  %v308_v43 = vperm.slane %v242_v22, %v281_v31 }
  0x99   :  { %v280_v40 = vsel %vm279_vm1, %v278_v33, %v276_v36  ;;  %v310_v47 = vperm.slane %v245_v23, %v285_v34 }
  0x9a   :  { %v284_v48 = vsel %vm283_vm2, %v282_v38, %v280_v40  ;;  %v309_v55 = vsel %vm283_vm2, %v308_v43, %v307_v46 }
  0x9b   :  { %v311_v58 = vsel %vm287_vm3, %v310_v47, %v309_v55 }
  0x9e   :  { %v221_v24 = vpop.xlane.xlu0 %220 }
  0x9f   :  { %v224_v26 = vpop.xlane.xlu2 %223  ;;  %v286_v41 = vperm.slane %v221_v24, %v285_v34 }
  0xa0   :  { %v227_v30 = vpop.xlane.xlu1 %226  ;;  %v290_v49 = vperm.slane %v224_v26, %v289_v39 }
  0xa1   :  { %v288_v51 = vsel %vm287_vm3, %v286_v41, %v284_v48  ;;  %v294_v52 = vperm.slane %v227_v30, %v293_v42 }
  0xa2   :  { %v292_v60 = vsel %vm291_vm4, %v290_v49, %v288_v51 }
  0xa3   :  { %v296_v63 = vsel %vm295_vm5, %v294_v52, %v292_v60 }
  0xa6   :  { %v248_v29 = vpop.xlane.xlu0 %247 }
  0xa7   :  { %v251_v32 = vpop.xlane.xlu2 %250  ;;  %v312_v50 = vperm.slane %v248_v29, %v289_v39 }
  0xa8   :  { %v254_v53 = vpop.xlane.xlu1 %253  ;;  %v314_v59 = vperm.slane %v251_v32, %v293_v42 }
  0xa9   :  { %v313_v61 = vsel %vm291_vm4, %v312_v50, %v311_v58  ;;  %v316_v62 = vperm.slane %v254_v53, %v297_v44 }
  0xaa   :  { %v315_v3 = vsel %vm295_vm5, %v314_v59, %v313_v61 }
  0xab   :  { %v317_v5 = vsel %vm299_vm6, %v316_v62, %v315_v3 }
  0xae   :  { %v230_v45 = vpop.xlane.xlu0 %229 }
  0xaf   :  { %v298_v56 = vperm.slane %v230_v45, %v297_v44  ;;  %v233_v57 = vpop.xlane.xlu2 %232 }
  0xb0   :  { %v302_v0 = vperm.slane %v233_v57, %v301_v54 }
  0xb1   :  { %v300_v1 = vsel %vm299_vm6, %v298_v56, %v296_v63 }
  0xb2   :  { %v304_v6 = vsel %vm303_vm7, %v302_v0, %v300_v1 }
  0xb6   :  { %v257_v2 = vpop.xlane.xlu0 %256 }
  0xb7   :  { %v318_v4 = vperm.slane %v257_v2, %v301_v54 }
  0xb9   :  { %v319_v7 = vsel %vm303_vm7, %v318_v4, %v317_v5 }
  0xba   :  { %v321_v8 = vsel %vm320_vm8, %v319_v7, %v304_v6 }
  0xbb   :  { %324 = vst.msk [vmem:[#allocation3] sm:$0x3] %vm323_vm9, %v321_v8 }
  0xbc   :  { %335 = dma.vmem_to_hbm [thread:$0]  %s331_s9, 32, %s333_s12, [#allocation4]  }
  0xbd   :  { %373 = dma.done.wait [#allocation4], 32  }
  0xbe   :  { %374 = vsyncadd [#allocation4], 4294967264 }
  0xbf   :  { %340 = vsyncpa [#allocation4], 1 }

</bundles_post_ra>
